<compile_context>
chip_gen: v5e
topology: v5e:2x2
jax: 0.10.0
libtpu: 0.0.40
codegen_flags: <defaults>
</compile_context>

<pallas_src>
import jax
import jax.numpy as jnp
from jax.experimental import pallas as pl
from jax.experimental.pallas import tpu as pltpu


def _round_up(x, m):
    return ((x + m - 1) // m) * m


def fused_affine_kernel(x_ref, w_ref, b_ref, out_ref):
    # Single GEMM for the folded 3-layer MLP.  x tile is cast to the weight
    # dtype in-kernel (bf16 MXU feed) while x stays in its native dtype in HBM
    # (no extra wrapper cast pass); accumulation + bias add are f32.
    x = x_ref[...].astype(w_ref.dtype)
    acc = jnp.dot(x, w_ref[...], preferred_element_type=jnp.float32)
    out_ref[...] = (acc + b_ref[...]).astype(out_ref.dtype)


def _vmem_cap_bytes():
    """Generation-aware VMEM cap with headroom for Mosaic internal scratch."""
    try:
        cap = int(pltpu.get_tpu_info().vmem_capacity_bytes)
    except Exception:
        cap = 64 * 1024 * 1024
    # leave ~8 MiB headroom; never below 32 MiB, never above 112 MiB.
    return min(max(cap - 8 * 1024 * 1024, 32 * 1024 * 1024), 112 * 1024 * 1024)


def simple_net_forward(x, params, *, tile_b=2048, compute_dtype=jnp.bfloat16):
    """x: [B, in_dim]. params: PyTorch-layout weights ([out, in]) and biases."""
    f32 = jnp.float32
    w1 = params["w1"].astype(f32)   # [h1, in]
    w2 = params["w2"].astype(f32)   # [h2, h1]
    w3 = params["w3"].astype(f32)   # [out, h2]
    b1 = params["b1"].astype(f32)
    b2 = params["b2"].astype(f32)
    b3 = params["b3"].astype(f32)

    # Exact fold (no activations): y = ((x W1ᵀ + b1) W2ᵀ + b2) W3ᵀ + b3
    #                                =  x @ Wf + bf
    wf = ((w1.T @ w2.T) @ w3.T).astype(compute_dtype)     # [in, out]
    bf = ((b1 @ w2.T + b2) @ w3.T + b3).reshape(1, -1)    # [1, out], f32

    B, in_dim = x.shape
    out_dim = wf.shape[1]

    # Batch tile: multiple of 8 (sublane rule).  No wrapper-side padding of x;
    # the tail tile (if B % tile_b != 0) is masked by Pallas.
    tile_b = _round_up(max(8, int(tile_b)), 8)
    if B <= 8:
        tile_b = B                      # single block == full array dim
    else:
        max_tile = (B // 8) * 8         # largest mult-of-8 block not exceeding B
        half = _round_up(pl.cdiv(B, 2), 8)   # >= 2 grid steps -> both v7x TCs busy
        tile_b = max(8, min(tile_b, max_tile, half))
    grid = (pl.cdiv(B, tile_b),)

    x_item = x.dtype.itemsize
    w_item = jnp.dtype(compute_dtype).itemsize
    out_item = x.dtype.itemsize

    weight_bytes = in_dim * out_dim * w_item + out_dim * 4
    # double-buffered x/out tiles + single-buffered resident weights/bias.
    tile_bytes = 2 * tile_b * in_dim * x_item + 2 * tile_b * out_dim * out_item
    vmem_limit = int(min(_vmem_cap_bytes(),
                         max(4 * 1024 * 1024,
                             2 * (weight_bytes + tile_bytes) + (1 << 20))))

    cost = pl.CostEstimate(
        flops=2 * B * in_dim * out_dim,
        transcendentals=0,
        bytes_accessed=(B * in_dim * x_item + B * out_dim * out_item
                        + weight_bytes),
    )

    # Wf / bf: constant index_map, single-buffered, VMEM-resident across steps.
    def resident(shape):
        return pl.BlockSpec(shape, lambda i: (0, 0),
                            pipeline_mode=pl.Buffered(1))

    out = pl.pallas_call(
        fused_affine_kernel,
        out_shape=jax.ShapeDtypeStruct((B, out_dim), x.dtype),
        grid=grid,
        in_specs=[
            pl.BlockSpec((tile_b, in_dim), lambda i: (i, 0)),
            resident(wf.shape),
            resident(bf.shape),
        ],
        out_specs=pl.BlockSpec((tile_b, out_dim), lambda i: (i, 0)),
        compiler_params=pltpu.CompilerParams(
            dimension_semantics=("parallel",),
            vmem_limit_bytes=vmem_limit,
        ),
        cost_estimate=cost,
    )(x, wf, bf)

    return out


def init_params(key, in_dim, n_hidden_1, n_hidden_2, out_dim):
    """Deterministic init mimicking PyTorch nn.Linear default (U(+-1/sqrt(fan_in)))."""
    ks = jax.random.split(key, 6)

    def lin(kw, kb, fan_in, fan_out):
        bound = 1.0 / jnp.sqrt(fan_in)
        w = jax.random.uniform(kw, (fan_out, fan_in), jnp.float32, -bound, bound)
        b = jax.random.uniform(kb, (fan_out,), jnp.float32, -bound, bound)
        return w, b

    w1, b1 = lin(ks[0], ks[1], in_dim, n_hidden_1)
    w2, b2 = lin(ks[2], ks[3], n_hidden_1, n_hidden_2)
    w3, b3 = lin(ks[4], ks[5], n_hidden_2, out_dim)
    return {"w1": w1, "b1": b1, "w2": w2, "b2": b2, "w3": w3, "b3": b3}


def _reference(x, params):
    h = x @ params["w1"].T + params["b1"]
    h = h @ params["w2"].T + params["b2"]
    return h @ params["w3"].T + params["b3"]


if __name__ == "__main__":
    key = jax.random.PRNGKey(0)
    kx, kp = jax.random.split(key)

    # Shapes consistent with Simple_Net(in_dim, n_hidden_1, n_hidden_2, out_dim)
    B, in_dim, n_hidden_1, n_hidden_2, out_dim = 8, 32, 64, 32, 10

    x = jax.random.normal(kx, (B, in_dim), jnp.float32)
    params = init_params(kp, in_dim, n_hidden_1, n_hidden_2, out_dim)
    ref = _reference(x, params)

    # f32 compute path (tight tolerance; fold changes rounding order slightly).
    out_f32 = simple_net_forward(x, params, compute_dtype=jnp.float32)
    jax.block_until_ready(out_f32)
    assert out_f32.shape == (B, out_dim)
    assert jnp.allclose(out_f32, ref, atol=2e-4, rtol=2e-4)

    # Default bf16 compute path (full MXU rate); looser tolerance.
    out_bf16 = simple_net_forward(x, params)
    jax.block_until_ready(out_bf16)
    assert out_bf16.shape == (B, out_dim)
    assert jnp.allclose(out_bf16, ref, atol=3e-2, rtol=3e-2)

    # Ragged batch (B not a multiple of 8) exercises the cdiv grid + masked tail.
    x13 = jax.random.normal(kx, (13, in_dim), jnp.float32)
    out13 = simple_net_forward(x13, params, compute_dtype=jnp.float32)
    jax.block_until_ready(out13)
    assert out13.shape == (13, out_dim)
    assert jnp.allclose(out13, _reference(x13, params), atol=2e-4, rtol=2e-4)

    print("KERNEL_OK")
</pallas_src>

<mosaic_0001>
module attributes {stable_mosaic.version = 11 : i64} {
  func.func @fused_affine_kernel(%arg0: i32, %arg1: memref<8x32xf32, #tpu.memory_space<vmem>>, %arg2: memref<32x10xf32, #tpu.memory_space<vmem>>, %arg3: memref<1x10xf32, #tpu.memory_space<vmem>>, %arg4: memref<8x10xf32, #tpu.memory_space<vmem>>) attributes {dimension_semantics = [#tpu.dimension_semantics<parallel>], iteration_bounds = array<i64: 1>, scalar_prefetch = 0 : i64, scratch_operands = 0 : i64, tpu.core_type = #tpu.core_type<tc>, window_params = [{transform_indices = @transform_0, window_bounds = array<i64: 8, 32>}, {pipeline_mode = #tpu.pipeline_mode<synchronous>, transform_indices = @transform_1, window_bounds = array<i64: 32, 10>}, {pipeline_mode = #tpu.pipeline_mode<synchronous>, transform_indices = @transform_2, window_bounds = array<i64: 1, 10>}, {transform_indices = @transform_3, window_bounds = array<i64: 8, 10>}]} {
    %c0 = arith.constant 0 : index
    %c0_0 = arith.constant 0 : index
    %0 = vector.load %arg1[%c0, %c0_0] : memref<8x32xf32, #tpu.memory_space<vmem>>, vector<8x32xf32>
    %c0_1 = arith.constant 0 : index
    %c0_2 = arith.constant 0 : index
    %1 = vector.load %arg2[%c0_1, %c0_2] : memref<32x10xf32, #tpu.memory_space<vmem>>, vector<32x10xf32>
    %cst = arith.constant dense<0.000000e+00> : vector<8x10xf32>
    %2 = tpu.matmul %0, %1, %cst {dimension_numbers = #tpu.dot_dimension_numbers<[1], [0], [0], [1], [0, 0, 1, 1], [], []>} : vector<8x32xf32>, vector<32x10xf32>, vector<8x10xf32> -> vector<8x10xf32>
    %c0_3 = arith.constant 0 : index
    %c0_4 = arith.constant 0 : index
    %3 = vector.load %arg3[%c0_3, %c0_4] : memref<1x10xf32, #tpu.memory_space<vmem>>, vector<1x10xf32>
    %4 = vector.broadcast %3 : vector<1x10xf32> to vector<8x10xf32>
    %5 = arith.addf %2, %4 : vector<8x10xf32>
    %c0_5 = arith.constant 0 : index
    %c0_6 = arith.constant 0 : index
    %6 = vector.load %arg4[%c0_5, %c0_6] : memref<8x10xf32, #tpu.memory_space<vmem>>, vector<8x10xf32>
    tpu.vector_store %arg4[%c0_5, %c0_6], %5 {strides = array<i32>} : memref<8x10xf32, #tpu.memory_space<vmem>>, vector<8x10xf32>,
    return
  }
  func.func @transform_0(%arg0: i32) -> (i32, i32) {
    %c0_i32 = arith.constant 0 : i32
    %c0_i32_0 = arith.constant 0 : i32
    return %arg0, %c0_i32 : i32, i32
  }
  func.func @transform_1(%arg0: i32) -> (i32, i32) {
    %c0_i32 = arith.constant 0 : i32
    %c0_i32_0 = arith.constant 0 : i32
    %c0_i32_1 = arith.constant 0 : i32
    return %c0_i32, %c0_i32_0 : i32, i32
  }
  func.func @transform_2(%arg0: i32) -> (i32, i32) {
    %c0_i32 = arith.constant 0 : i32
    %c0_i32_0 = arith.constant 0 : i32
    %c0_i32_1 = arith.constant 0 : i32
    return %c0_i32, %c0_i32_0 : i32, i32
  }
  func.func @transform_3(%arg0: i32) -> (i32, i32) {
    %c0_i32 = arith.constant 0 : i32
    %c0_i32_0 = arith.constant 0 : i32
    return %arg0, %c0_i32 : i32, i32
  }
}

</mosaic_0001>

<bundles_post_ra>
// kernel: tpu_custom_call.1
= control target key start
LH: loop header
LB: loop body
LE: loop exit
PB: predicated region body
PF: predicated region fallthrough
CT: control target
= control target key end

     0   :  { %s137_s0 = inlined_call_operand.vmem [shape: f32[8,32], index: 0, kind: input, shape index: {}]   ;;  %s138_s1 = inlined_call_operand.vmem [shape: f32[32,10], index: 1, kind: input, shape index: {}]   ;;  %s139_s2 = inlined_call_operand.vmem [shape: f32[1,10], index: 2, kind: input, shape index: {}]   ;;  %s140_s3 = inlined_call_operand.hbm [shape: f32[8,10], index: 3, kind: output, shape index: {}]  }
   0x1   :  { %v19_v0 = vld [vmem:[%s138_s1 + $0x18] sm:$0xff]  ;;  %v18_v1 = vld [vmem:[%s138_s1 + $0x10] sm:$0xff]  ;;  %v17_v2 = vld [vmem:[%s138_s1 + $0x8] sm:$0xff] }
   0x2   :  { %40 = vmatpush.msra.mxu0 %v19_v0 }
   0x3   :  { %8 = vsyncpa [#allocation3], 0  ;;  %v16_v3 = vld [vmem:[%s138_s1] sm:$0xff]  ;;  %vm24_vm0 = vcmask 261120   ;;  %s95_s24 = smov [#allocation2]   ;;  %s57_s28 = sshll.u32 %s140_s3, 4  ;;  %s58_s28 = int_to_ptr.hbm [resolvable:$true] %s57_s28 }
   0x4   :  { %41 = vmatpush.msra.mxu0 %v18_v1  ;;  %v15_v4 = vld [vmem:[%s137_s0] sm:$0xff]  ;;  %s55_s25 = sshll.u32 %s95_s24, 4  ;;  %vm48_vm1 = vcmask 80896   ;;  %s56_s25 = int_to_ptr.vmem [resolvable:$true] %s55_s25 }
   0x5   :  { %v68_v5 = vld [vmem:[%s139_s2] ss:$0 sm:$0xff] }
   0x6   :  { %42 = vmatpush.msra.mxu0 %v17_v2 }
   0x8   :  { %43 = vmatpush.msra.mxu0 %v16_v3 }
   0x9   :  { %66 = vmatmul.msk.f32.vlgmr.msra.gmra.mxu0 %vm24_vm0, %v15_v4 }
  0x86   :  { %v45_v6 = vpop.f32.mrf.mxu0 }
  0x87   :  { %v46_v7 = vadd.f32 %v68_v5, %v45_v6 }
  0x89   :  { %49 = vst.msk [vmem:[#allocation2] sm:$0xff] %vm48_vm1, %v46_v7 }
  0x8a   :  { %60 = dma.vmem_to_hbm [thread:$0]  %s56_s25, 128, %s58_s28, [#allocation3]  }
  0x8b   :  { %93 = dma.done.wait [#allocation3], 128  }
  0x8c   :  { %94 = vsyncadd [#allocation3], 4294967168 }
  0x8d   :  { %65 = vsyncpa [#allocation3], 1 }

</bundles_post_ra>
